<compile_context>
chip_gen: v7x
topology: tpu7x:2x2x1
jax: 0.10.0
libtpu: 0.0.40
codegen_flags: <defaults>
</compile_context>

<pallas_src>
import functools
import numpy as np
import jax
import jax.numpy as jnp
from jax.experimental import pallas as pl
from jax.experimental.pallas import tpu as pltpu


LOG10_INV = float(1.0 / np.log(10.0))
_LANE = 128


def _round_up(x, m):
    return ((x + m - 1) // m) * m


def _spectrogram_kernel(frames_ref, w_ref, melw_ref, melb_ref, out_ref, *, f_pad):
    # frames: (TM, n_fft)   w: (n_fft, 2*f_pad) = [win*cos || -win*sin]
    # melw:   (f_pad, mels_pad) with log10/mean/std/affine pre-folded
    ri = jnp.dot(frames_ref[...], w_ref[...], preferred_element_type=jnp.float32)
    re = ri[:, :f_pad]                       # 128-aligned halves: no relayout copies
    im = ri[:, f_pad:]
    power = re * re + im * im
    logp = jnp.log(power + jnp.float32(1e-8))        # EUP; log10 scale folded into melw
    out_ref[...] = (jnp.dot(logp, melw_ref[...], preferred_element_type=jnp.float32)
                    + melb_ref[...])


def make_spectrogram_params(n_fft, mels, key):
    """Deterministic parameter initialization (shapes follow the nn.Module)."""
    stft_size = n_fft // 2 + 1
    n = np.arange(n_fft)
    k = np.arange(stft_size)
    # torch.hann_window(n_fft) (periodic=True)
    window = 0.5 * (1.0 - np.cos(2.0 * np.pi * n / n_fft))
    ang = 2.0 * np.pi * np.outer(n, k) / n_fft
    cos_m = (window[:, None] * np.cos(ang)).astype(np.float32)          # (n_fft, F)
    sin_m = (-window[:, None] * np.sin(ang)).astype(np.float32)         # (n_fft, F)

    k_mean, k_std, k_w, k_b = jax.random.split(key, 4)
    mean = jax.random.normal(k_mean, (1, stft_size), jnp.float32) * 0.5
    std = jnp.abs(jax.random.normal(k_std, (1, stft_size), jnp.float32)) + 0.5
    affine_scale = jnp.ones((1, stft_size), jnp.float32)
    affine_bias = jnp.zeros((1, stft_size), jnp.float32)

    # Conv1d(stft_size, mels, kernel_size=1) weights, stored as (F, mels)
    bound = 1.0 / np.sqrt(stft_size)
    mel_w = jax.random.uniform(k_w, (stft_size, mels), jnp.float32, -bound, bound)
    mel_b = jax.random.uniform(k_b, (1, mels), jnp.float32, -bound, bound)

    return dict(cos=jnp.asarray(cos_m), sin=jnp.asarray(sin_m),
                mean=mean, std=std,
                affine_scale=affine_scale, affine_bias=affine_bias,
                mel_w=mel_w, mel_b=mel_b)


def fold_spectrogram_params(params, n_fft):
    """Fold log10 + (x-mean)/std*scale+bias into the mel projection; lane-pad."""
    F = n_fft // 2 + 1
    f_pad = _round_up(F, _LANE)
    mels = params["mel_w"].shape[1]
    mels_pad = _round_up(mels, _LANE)

    a = (params["affine_scale"] * LOG10_INV / params["std"]).reshape(F)         # (F,)
    c = (params["affine_bias"]
         - params["mean"] * params["affine_scale"] / params["std"]).reshape(F)  # (F,)
    melw = params["mel_w"] * a[:, None]                                         # (F, mels)
    melb = params["mel_b"] + c[None, :] @ params["mel_w"]                       # (1, mels)

    # Zero-pad: dead frequency lanes have power=0 and melw row 0 -> no contribution,
    # dead mel lanes are sliced off in glue. No NaN hazards (std already folded).
    melw_p = jnp.zeros((f_pad, mels_pad), jnp.float32).at[:F, :mels].set(melw)
    melb_p = jnp.zeros((1, mels_pad), jnp.float32).at[:, :mels].set(melb)
    cos_p = jnp.zeros((n_fft, f_pad), jnp.float32).at[:, :F].set(params["cos"])
    sin_p = jnp.zeros((n_fft, f_pad), jnp.float32).at[:, :F].set(params["sin"])
    w = jnp.concatenate([cos_p, sin_p], axis=1)                                 # (n_fft, 2*f_pad)

    return dict(w=w, mel_w=melw_p, mel_b=melb_p,
                f_pad=int(f_pad), mels=int(mels), mels_pad=int(mels_pad))


def _pick_tm(M, n_fft, f_pad, mels_pad, budget_bytes=24 << 20):
    """Largest frame-tile (multiple of 8) whose double-buffered footprint fits the
    VMEM budget after the resident DFT/mel weights (conservative for v7x 64 MiB)."""
    resident = 4 * (n_fft * 2 * f_pad + f_pad * mels_pad + mels_pad)
    # per row: 2x frames buf + 2x out buf + f32 intermediates (~2*f_pad lanes)
    per_row = 4 * (2 * n_fft + 2 * mels_pad + 2 * (2 * f_pad))
    tm = max(8, (budget_bytes - resident) // per_row)
    tm = max(8, min(2048, (tm // 8) * 8))
    tm = min(tm, _round_up(M, 8))          # don't over-pad tiny inputs
    return int(tm)


def spectrogram_forward(audio, fparams, n_fft, hop):
    """audio: (B, 1, T) float32 -> (B, mels, T') float32."""
    B, C, T = audio.shape
    rows = B * C
    signal = audio.reshape(rows, T)                                     # view(-1, T)
    pad = n_fft // 2
    padded = jnp.pad(signal, ((0, 0), (pad, pad)), mode="reflect")      # center=True
    n_frames = 1 + T // hop
    # TODO(synk): for hop < n_fft, build the overlapping frames inside the kernel
    # (manual DMA of the padded signal) instead of this host gather; the gather
    # inflates the kernel's frame HBM read traffic by ~n_fft/hop.
    idx = jnp.arange(n_frames)[:, None] * hop + jnp.arange(n_fft)[None, :]
    frames = padded[:, idx].reshape(rows * n_frames, n_fft).astype(jnp.float32)

    M = rows * n_frames
    f_pad, mels, mels_pad = fparams["f_pad"], fparams["mels"], fparams["mels_pad"]
    w, melw, melb = fparams["w"], fparams["mel_w"], fparams["mel_b"]

    tm = _pick_tm(M, n_fft, f_pad, mels_pad)
    m_pad = _round_up(M, tm)
    if m_pad != M:
        frames = jnp.pad(frames, ((0, m_pad - M), (0, 0)))
    grid = (m_pad // tm,)

    resident_bytes = 4 * (w.size + melw.size + melb.size)
    tile_bytes = 4 * tm * (n_fft + mels_pad + 4 * f_pad)
    vmem_limit = int(min(64 << 20, max(16 << 20, resident_bytes + 3 * tile_bytes)))

    cost = pl.CostEstimate(
        flops=2 * m_pad * n_fft * (2 * f_pad) + 2 * m_pad * f_pad * mels_pad,
        transcendentals=m_pad * f_pad,
        bytes_accessed=4 * (m_pad * n_fft + int(w.size) + int(melw.size)
                            + int(melb.size) + m_pad * mels_pad),
    )

    out = pl.pallas_call(
        functools.partial(_spectrogram_kernel, f_pad=f_pad),
        out_shape=jax.ShapeDtypeStruct((m_pad, mels_pad), jnp.float32),
        grid=grid,
        in_specs=[
            pl.BlockSpec((tm, n_fft), lambda i: (i, 0)),          # streamed frame tiles
            pl.BlockSpec((n_fft, 2 * f_pad), lambda i: (0, 0)),   # resident DFT weights
            pl.BlockSpec((f_pad, mels_pad), lambda i: (0, 0)),    # resident mel weights
            pl.BlockSpec((1, mels_pad), lambda i: (0, 0)),        # resident mel bias
        ],
        out_specs=pl.BlockSpec((tm, mels_pad), lambda i: (i, 0)),
        compiler_params=pltpu.CompilerParams(
            dimension_semantics=("parallel",),
            vmem_limit_bytes=vmem_limit,
        ),
        cost_estimate=cost,
    )(frames, w, melw, melb)

    out = out[:M, :mels].reshape(rows, n_frames, mels)
    # TODO(synk): F.interpolate(..., mode='linear', align_corners=True) for
    # target_length is not implemented (forward default target_length=None).
    return jnp.transpose(out, (0, 2, 1))                                # (B, mels, T')


def _reference_forward(audio, params, n_fft, hop):
    """Pure-JAX reference with the un-folded math, for a correctness check."""
    B, C, T = audio.shape
    signal = audio.reshape(B * C, T)
    pad = n_fft // 2
    padded = jnp.pad(signal, ((0, 0), (pad, pad)), mode="reflect")
    n_frames = 1 + T // hop
    idx = jnp.arange(n_frames)[:, None] * hop + jnp.arange(n_fft)[None, :]
    frames = padded[:, idx].astype(jnp.float32)                         # (B, T', n_fft)
    re = jnp.einsum("btn,nf->btf", frames, params["cos"])
    im = jnp.einsum("btn,nf->btf", frames, params["sin"])
    mag = jnp.log10(re * re + im * im + 1e-8)
    mag = (mag - params["mean"][None]) / params["std"][None]
    mag = mag * params["affine_scale"][None] + params["affine_bias"][None]
    out = jnp.einsum("btf,fm->btm", mag, params["mel_w"]) + params["mel_b"][None]
    return jnp.transpose(out, (0, 2, 1))


if __name__ == "__main__":
    n_fft, hop, mels, sr = 32, 8, 16, 16000
    B, T = 2, 64

    key = jax.random.PRNGKey(0)
    k_audio, k_params = jax.random.split(key)
    audio = jax.random.normal(k_audio, (B, 1, T), jnp.float32)
    params = make_spectrogram_params(n_fft, mels, k_params)
    fparams = fold_spectrogram_params(params, n_fft)

    out = spectrogram_forward(audio, fparams, n_fft, hop)
    out = jax.block_until_ready(out)

    ref = _reference_forward(audio, params, n_fft, hop)
    assert out.shape == (B, mels, 1 + T // hop), out.shape
    np.testing.assert_allclose(np.asarray(out), np.asarray(ref), rtol=2e-4, atol=2e-4)

    print("KERNEL_OK")
</pallas_src>

<mosaic_0001>
module attributes {stable_mosaic.version = 11 : i64} {
  func.func @_spectrogram_kernel(%arg0: i32, %arg1: memref<24x32xf32, #tpu.memory_space<vmem>>, %arg2: memref<32x256xf32, #tpu.memory_space<vmem>>, %arg3: memref<128x128xf32, #tpu.memory_space<vmem>>, %arg4: memref<1x128xf32, #tpu.memory_space<vmem>>, %arg5: memref<24x128xf32, #tpu.memory_space<vmem>>) attributes {dimension_semantics = [#tpu.dimension_semantics<parallel>], iteration_bounds = array<i64: 1>, scalar_prefetch = 0 : i64, scratch_operands = 0 : i64, tpu.core_type = #tpu.core_type<tc>, window_params = [{transform_indices = @transform_0, window_bounds = array<i64: 24, 32>}, {pipeline_mode = #tpu.pipeline_mode<synchronous>, transform_indices = @transform_1, window_bounds = array<i64: 32, 256>}, {pipeline_mode = #tpu.pipeline_mode<synchronous>, transform_indices = @transform_2, window_bounds = array<i64: 128, 128>}, {pipeline_mode = #tpu.pipeline_mode<synchronous>, transform_indices = @transform_3, window_bounds = array<i64: 1, 128>}, {transform_indices = @transform_4, window_bounds = array<i64: 24, 128>}]} {
    %c0 = arith.constant 0 : index
    %c0_0 = arith.constant 0 : index
    %0 = vector.load %arg1[%c0, %c0_0] : memref<24x32xf32, #tpu.memory_space<vmem>>, vector<24x32xf32>
    %c0_1 = arith.constant 0 : index
    %c0_2 = arith.constant 0 : index
    %1 = vector.load %arg2[%c0_1, %c0_2] : memref<32x256xf32, #tpu.memory_space<vmem>>, vector<32x256xf32>
    %cst = arith.constant dense<0.000000e+00> : vector<24x256xf32>
    %2 = tpu.matmul %0, %1, %cst {dimension_numbers = #tpu.dot_dimension_numbers<[1], [0], [0], [1], [0, 0, 1, 1], [], []>} : vector<24x32xf32>, vector<32x256xf32>, vector<24x256xf32> -> vector<24x256xf32>
    %3 = vector.extract_strided_slice %2 {offsets = [0, 0], sizes = [24, 128], strides = [1, 1]} : vector<24x256xf32> to vector<24x128xf32>
    %4 = vector.extract_strided_slice %2 {offsets = [0, 128], sizes = [24, 128], strides = [1, 1]} : vector<24x256xf32> to vector<24x128xf32>
    %5 = arith.mulf %3, %3 : vector<24x128xf32>
    %6 = arith.mulf %4, %4 : vector<24x128xf32>
    %7 = arith.addf %5, %6 : vector<24x128xf32>
    %cst_3 = arith.constant 9.99999993E-9 : f32
    %8 = vector.broadcast %cst_3 : f32 to vector<24x128xf32>
    %9 = arith.addf %7, %8 : vector<24x128xf32>
    %10 = math.log %9 : vector<24x128xf32>
    %c0_4 = arith.constant 0 : index
    %c0_5 = arith.constant 0 : index
    %11 = vector.load %arg3[%c0_4, %c0_5] : memref<128x128xf32, #tpu.memory_space<vmem>>, vector<128x128xf32>
    %cst_6 = arith.constant dense<0.000000e+00> : vector<24x128xf32>
    %12 = tpu.matmul %10, %11, %cst_6 {dimension_numbers = #tpu.dot_dimension_numbers<[1], [0], [0], [1], [0, 0, 1, 1], [], []>} : vector<24x128xf32>, vector<128x128xf32>, vector<24x128xf32> -> vector<24x128xf32>
    %c0_7 = arith.constant 0 : index
    %c0_8 = arith.constant 0 : index
    %13 = vector.load %arg4[%c0_7, %c0_8] : memref<1x128xf32, #tpu.memory_space<vmem>>, vector<1x128xf32>
    %14 = vector.broadcast %13 : vector<1x128xf32> to vector<24x128xf32>
    %15 = arith.addf %12, %14 : vector<24x128xf32>
    %c0_9 = arith.constant 0 : index
    %c0_10 = arith.constant 0 : index
    %16 = vector.load %arg5[%c0_9, %c0_10] : memref<24x128xf32, #tpu.memory_space<vmem>>, vector<24x128xf32>
    tpu.vector_store %arg5[%c0_9, %c0_10], %15 {strides = array<i32>} : memref<24x128xf32, #tpu.memory_space<vmem>>, vector<24x128xf32>,
    return
  }
  func.func @transform_0(%arg0: i32) -> (i32, i32) {
    %c0_i32 = arith.constant 0 : i32
    %c0_i32_0 = arith.constant 0 : i32
    return %arg0, %c0_i32 : i32, i32
  }
  func.func @transform_1(%arg0: i32) -> (i32, i32) {
    %c0_i32 = arith.constant 0 : i32
    %c0_i32_0 = arith.constant 0 : i32
    %c0_i32_1 = arith.constant 0 : i32
    return %c0_i32, %c0_i32_0 : i32, i32
  }
  func.func @transform_2(%arg0: i32) -> (i32, i32) {
    %c0_i32 = arith.constant 0 : i32
    %c0_i32_0 = arith.constant 0 : i32
    %c0_i32_1 = arith.constant 0 : i32
    return %c0_i32, %c0_i32_0 : i32, i32
  }
  func.func @transform_3(%arg0: i32) -> (i32, i32) {
    %c0_i32 = arith.constant 0 : i32
    %c0_i32_0 = arith.constant 0 : i32
    %c0_i32_1 = arith.constant 0 : i32
    return %c0_i32, %c0_i32_0 : i32, i32
  }
  func.func @transform_4(%arg0: i32) -> (i32, i32) {
    %c0_i32 = arith.constant 0 : i32
    %c0_i32_0 = arith.constant 0 : i32
    return %arg0, %c0_i32 : i32, i32
  }
}

</mosaic_0001>

<bundles_post_ra>
// kernel: tpu_custom_call.1
= control target key start
LH: loop header
LB: loop body
LE: loop exit
PB: predicated region body
PF: predicated region fallthrough
CT: control target
= control target key end

     0   :  { %9 = vsyncpa [#allocation3], 0  ;;  %s617_s0 = inlined_call_operand.hbm [shape: f32[24,32], index: 0, kind: input, shape index: {}]   ;;  %s618_s1 = inlined_call_operand.hbm [shape: f32[32,256], index: 1, kind: input, shape index: {}]   ;;  %s619_s2 = inlined_call_operand.hbm [shape: f32[128,128], index: 2, kind: input, shape index: {}]   ;;  %s620_s3 = inlined_call_operand.vmem [shape: f32[1,128], index: 3, kind: input, shape index: {}]   ;;  %s621_s4 = inlined_call_operand.hbm [shape: f32[24,128], index: 4, kind: output, shape index: {}]  }
   0x1   :  { %10 = vsyncpa [#allocation6], 0 }
   0x2   :  { %11 = vsyncpa [#allocation4], 0  ;;  %s512_s15 = smov [#allocation5]   ;;  %s418_s19 = scalar_lea.hbm %s618_s1, 1024 }
   0x3   :  { %s29_s16 = sshll.u32 %s512_s15, 4  ;;  %p419_p0 = scmp.ne.s32.totalorder %s618_s1, %s418_s19  ;;  %s30_s16 = int_to_ptr.vmem [resolvable:$true] %s29_s16 }
   0x4   :  { %p422_p1 = scmp.lt.u32.totalorder %s418_s19, %s618_s1 }
   0x6   :  { %p424_p2 = pnand %p422_p1, %p419_p0 }
   0x8   :  { %427 = shalt.err (!%p424_p2)
}
   0x9   :  { %s428_s24 = scalar_lea.vmem %s30_s16, 1024  ;;  %p433_p4 = scmp.lt.s32.totalorder %s30_s16, %s30_s16 }
   0xa   :  { %p429_p3 = scmp.ne.s32.totalorder %s30_s16, %s428_s24  ;;  %p434_p5 = scmp.lt.s32.totalorder %s428_s24, %s428_s24 }
   0xc   :  { %p435_p6 = por %p434_p5, %p433_p4 }
   0xe   :  { %p436_p7 = pnand %p435_p6, %p429_p3 }
  0x10   :  { %439 = shalt.err (!%p436_p7)
}
  0x11   :  { %s513_s25 = smov 256   ;;  %s514_s26 = smov 16  }
  0x12   :  { %35 = dma.hbm_to_vmem [thread:$0]  %s618_s1, 1024, %s30_s16, [#allocation6], %s513_s25, %s513_s25, %s514_s26  }
  0x13   :  { %s515_s29 = smov [#allocation2]   ;;  %s440_s7 = scalar_lea.hbm %s617_s0, 384 }
  0x14   :  { %s17_s30 = sshll.u32 %s515_s29, 4  ;;  %p441_p8 = scmp.ne.s32.totalorder %s617_s0, %s440_s7  ;;  %s18_s30 = int_to_ptr.vmem [resolvable:$true] %s17_s30 }
  0x15   :  { %p444_p9 = scmp.lt.u32.totalorder %s440_s7, %s617_s0 }
  0x17   :  { %p446_p10 = pnand %p444_p9, %p441_p8 }
  0x19   :  { %449 = shalt.err (!%p446_p10)
}
  0x1a   :  { %s450_s12 = scalar_lea.vmem %s18_s30, 384  ;;  %p455_p12 = scmp.lt.s32.totalorder %s18_s30, %s18_s30 }
  0x1b   :  { %p451_p11 = scmp.ne.s32.totalorder %s18_s30, %s450_s12  ;;  %p456_p13 = scmp.lt.s32.totalorder %s450_s12, %s450_s12 }
  0x1d   :  { %p457_p0 = por %p456_p13, %p455_p12 }
  0x1f   :  { %p458_p1 = pnand %p457_p0, %p451_p11 }
  0x21   :  { %461 = shalt.err (!%p458_p1)
}
  0x22   :  { %s516_s1 = smov 128   ;;  %s517_s13 = smov 8  }
  0x23   :  { %23 = dma.hbm_to_vmem [thread:$0]  %s617_s0, 384, %s18_s30, [#allocation3], %s516_s1, %s516_s1, %s517_s13  }
  0x24   :  { %s518_s16 = smov [#allocation7]   ;;  %s462_s20 = scalar_lea.hbm %s619_s2, 2048 }
  0x25   :  { %s41_s17 = sshll.u32 %s518_s16, 4  ;;  %p463_p2 = scmp.ne.s32.totalorder %s619_s2, %s462_s20  ;;  %s42_s17 = int_to_ptr.vmem [resolvable:$true] %s41_s17 }
  0x26   :  { %p466_p3 = scmp.lt.u32.totalorder %s462_s20, %s619_s2 }
  0x28   :  { %p468_p4 = pnand %p466_p3, %p463_p2 }
  0x2a   :  { %471 = shalt.err (!%p468_p4)
}
  0x2b   :  { %s472_s25 = scalar_lea.vmem %s42_s17, 2048  ;;  %p477_p6 = scmp.lt.s32.totalorder %s42_s17, %s42_s17 }
  0x2c   :  { %p473_p5 = scmp.ne.s32.totalorder %s42_s17, %s472_s25  ;;  %p478_p7 = scmp.lt.s32.totalorder %s472_s25, %s472_s25 }
  0x2e   :  { %p479_p8 = por %p478_p7, %p477_p6 }
  0x30   :  { %p480_p9 = pnand %p479_p8, %p473_p5 }
  0x32   :  { %483 = shalt.err (!%p480_p9)
}
  0x33   :  { %47 = dma.hbm_to_vmem [thread:$0]  %s619_s2, 2048, %s42_s17, [#allocation6], %s516_s1, %s516_s1, %s517_s13  }
  0x34   :  { %506 = dma.done.wait [#allocation3], 384  }
  0x35   :  { %507 = vsyncadd [#allocation3], 4294966912 }
  0x36   :  { %508 = dma.done.wait [#allocation6], 3072  }
  0x37   :  { %509 = vsyncadd [#allocation6], 4294964224  ;;  %v519_v0 = vmov 0.0   ;;  %v520_v1 = vmov 0.0|0.0   ;;  %v63_v2 = vld [vmem:[#allocation5 + $0x8] sm:$0xff]  ;;  %v65_v3 = vld [vmem:[#allocation5 + $0x18] sm:$0xff] }
  0x38   :  { %144 = vmatprep.mubr.f32.mxu0 %v519_v0  ;;  %377 = vmatprep.subr.bf16.mxu1 %v520_v1  ;;  %v62_v4 = vld [vmem:[#allocation5] sm:$0xff]  ;;  %v369_v5 = vpack.c.bf16 %v65_v3, %v63_v2  ;;  %v64_v6 = vld [vmem:[#allocation5 + $0x10] sm:$0xff]  ;;  %v67_v7 = vld [vmem:[#allocation5 + $0x28] sm:$0xff]  ;;  %vm70_vm0 = vcmask 261120   ;;  %vm521_vm1 = vmmov 0   ;;  %s522_s28 = smov [#allocation8]  }
  0x39   :  { %v69_v8 = vld [vmem:[#allocation5 + $0x38] sm:$0xff]  ;;  %v371_v9 = vpack.c.bf16 %v64_v6, %v62_v4  ;;  %v66_v11 = vld [vmem:[#allocation5 + $0x20] sm:$0xff]  ;;  %v68_v12 = vld [vmem:[#allocation5 + $0x30] sm:$0xff]  ;;  %360 = vmatprep.mubr.msk.f32.mxu1 %vm521_vm1, %v519_v0  ;;  %s292_s29 = sshll.u32 %s522_s28, 4  ;;  %s293_s29 = int_to_ptr.vmem [resolvable:$true] %s292_s29 }
  0x3a   :  { %v373_v10 = vpack.c.bf16 %v69_v8, %v67_v7  ;;  %370 = vmatprep.subr.bf16.mxu0 %v369_v5  ;;  %v181_v13 = vld [vmem:[#allocation7] sm:$0xff]  ;;  %v375_v14 = vpack.c.bf16 %v68_v12, %v66_v11  ;;  %v182_v15 = vld [vmem:[#allocation7 + $0x8] sm:$0xff]  ;;  %v183_v16 = vld [vmem:[#allocation7 + $0x10] sm:$0xff]  ;;  %s484_s30 = scalar_lea.vmem %s293_s29, 384  ;;  %p489_p11 = scmp.lt.s32.totalorder %s293_s29, %s293_s29 }
  0x3b   :  { %372 = vmatpush1.bf16.msra.mxu0 %v371_v9  ;;  %v184_v17 = vld [vmem:[#allocation7 + $0x18] sm:$0xff]  ;;  %v378_v18 = vpack.c.bf16 %v182_v15, %v181_v13  ;;  %v59_v20 = vld [vmem:[#allocation2] sm:$0xff]  ;;  %v185_v21 = vld [vmem:[#allocation7 + $0x20] sm:$0xff]  ;;  %p485_p10 = scmp.ne.s32.totalorder %s293_s29, %s484_s30  ;;  %p490_p12 = scmp.lt.s32.totalorder %s484_s30, %s484_s30 }
  0x3c   :  { %374 = vmatprep.subr.bf16.mxu0 %v373_v10  ;;  %v381_v19 = vpack.c.bf16 %v184_v17, %v183_v16  ;;  %v186_v22 = vld [vmem:[#allocation7 + $0x28] sm:$0xff]  ;;  %v60_v24 = vld [vmem:[#allocation2 + $0x8] sm:$0xff]  ;;  %v61_v25 = vld [vmem:[#allocation2 + $0x10] sm:$0xff] }
  0x3d   :  { %379 = vmatpush3.bf16.msra.mxu1 %v378_v18  ;;  %v384_v23 = vpack.c.bf16 %v186_v22, %v185_v21  ;;  %v187_v26 = vld [vmem:[#allocation7 + $0x30] sm:$0xff]  ;;  %v188_v27 = vld [vmem:[#allocation7 + $0x38] sm:$0xff]  ;;  %v189_v29 = vld [vmem:[#allocation7 + $0x40] sm:$0xff]  ;;  %p491_p13 = por %p490_p12, %p489_p11 }
  0x3e   :  { %380 = vmatprep.subr.bf16.mxu1 %v520_v1  ;;  %v387_v28 = vpack.c.bf16 %v188_v27, %v187_v26  ;;  %v190_v30 = vld [vmem:[#allocation7 + $0x48] sm:$0xff]  ;;  %v191_v32 = vld [vmem:[#allocation7 + $0x50] sm:$0xff]  ;;  %v192_v33 = vld [vmem:[#allocation7 + $0x58] sm:$0xff] }
  0x3f   :  { %376 = vmatpush1.bf16.msra.mxu0 %v375_v14  ;;  %v390_v31 = vpack.c.bf16 %v190_v30, %v189_v29  ;;  %v393_v34 = vpack.c.bf16 %v192_v33, %v191_v32  ;;  %v193_v35 = vld [vmem:[#allocation7 + $0x60] sm:$0xff]  ;;  %v194_v36 = vld [vmem:[#allocation7 + $0x68] sm:$0xff]  ;;  %v195_v38 = vld [vmem:[#allocation7 + $0x70] sm:$0xff]  ;;  %p492_p0 = pnand %p491_p13, %p485_p10 }
  0x40   :  { %v396_v37 = vpack.c.bf16 %v194_v36, %v193_v35  ;;  %v196_v39 = vld [vmem:[#allocation7 + $0x78] sm:$0xff]  ;;  %v308_v2 = vld [vmem:[%s620_s3] ss:$0 sm:$0xff] }
  0x41   :  { %382 = vmatpush3.bf16.msra.mxu1 %v381_v19  ;;  %v399_v40 = vpack.c.bf16 %v196_v39, %v195_v38 }
  0x42   :  { %305 = vmatmul.mubr.msk.f32.vlgmr.msra.gmra.mrb[0].mxu0 %vm70_vm0, %v59_v20  ;;  %383 = vmatprep.subr.bf16.mxu1 %v520_v1 }
  0x43   :  { %150 = vmatprep.mubr.f32.mxu0 %v519_v0 }
  0x45   :  { %385 = vmatpush3.bf16.msra.mxu1 %v384_v23 }
  0x46   :  { %306 = vmatmul.mubr.msk.f32.gmra.mrb[2].mxu0 %vm70_vm0, %v60_v24  ;;  %386 = vmatprep.subr.bf16.mxu1 %v520_v1 }
  0x47   :  { %156 = vmatprep.mubr.f32.mxu0 %v519_v0 }
  0x49   :  { %388 = vmatpush3.bf16.msra.mxu1 %v387_v28 }
  0x4a   :  { %307 = vmatmul.mubr.msk.f32.gmra.mrb[4].mxu0 %vm70_vm0, %v61_v25  ;;  %389 = vmatprep.subr.bf16.mxu1 %v520_v1 }
  0x4d   :  { %391 = vmatpush3.bf16.msra.mxu1 %v390_v31 }
  0x4e   :  { %392 = vmatprep.subr.bf16.mxu1 %v520_v1 }
  0x51   :  { %394 = vmatpush3.bf16.msra.mxu1 %v393_v34 }
  0x52   :  { %395 = vmatprep.subr.bf16.mxu1 %v520_v1 }
  0x55   :  { %397 = vmatpush3.bf16.msra.mxu1 %v396_v37 }
  0x56   :  { %398 = vmatprep.subr.bf16.mxu1 %v520_v1 }
  0x59   :  { %400 = vmatpush3.bf16.msra.mxu1 %v399_v40 }
 0x115   :  { %v146_v41 = vpop.f32.mrb[0].mxu0 }
 0x116   :  { %v163_v42 = vmul.f32 %v146_v41, %v146_v41  ;;  %v148_v43 = vpop.f32.mrb[1].mxu0 }
 0x117   :  { %v166_v44 = vmul.f32 %v148_v43, %v148_v43 }
 0x119   :  { %v169_v45 = vadd.f32 %v166_v44, %v163_v42  ;;  %v152_v46 = vpop.f32.mrb[2].mxu0 }
 0x11a   :  { %v164_v47 = vmul.f32 %v152_v46, %v152_v46  ;;  %v154_v48 = vpop.f32.mrb[3].mxu0 }
 0x11b   :  { %v172_v49 = vadd.f32 1e-08, %v169_v45  ;;  %v167_v50 = vmul.f32 %v154_v48, %v154_v48 }
 0x11d   :  { %412 = vlog2.f32 %v172_v49  ;;  %v170_v51 = vadd.f32 %v167_v50, %v164_v47  ;;  %v158_v52 = vpop.f32.mrb[4].mxu0 }
 0x11e   :  { %v165_v53 = vmul.f32 %v158_v52, %v158_v52  ;;  %v160_v54 = vpop.f32.mrb[5].mxu0 }
 0x11f   :  { %v173_v55 = vadd.f32 1e-08, %v170_v51  ;;  %v168_v56 = vmul.f32 %v160_v54, %v160_v54 }
 0x121   :  { %414 = vlog2.f32 %v173_v55  ;;  %v171_v57 = vadd.f32 %v168_v56, %v165_v53 }
 0x123   :  { %v174_v58 = vadd.f32 1e-08, %v171_v57 }
 0x125   :  { %416 = vlog2.f32 %v174_v58 }
 0x127   :  { %v413_v59 = vpop.eup %412 }
 0x128   :  { %v176_v60 = vmul.f32 0.6931472, %v413_v59 }
 0x12a   :  { %361 = vmatmul.mubr.f32.vlgmr.msra.gmra.mrb[0].mxu1 %v176_v60 }
 0x12b   :  { %v415_v61 = vpop.eup %414  ;;  %363 = vmatprep.mubr.msk.f32.mxu1 %vm521_vm1, %v519_v0 }
 0x12c   :  { %v178_v62 = vmul.f32 0.6931472, %v415_v61 }
 0x12e   :  { %364 = vmatmul.mubr.f32.gmra.mrb[2].mxu1 %v178_v62 }
 0x12f   :  { %v417_v63 = vpop.eup %416  ;;  %366 = vmatprep.mubr.msk.f32.mxu1 %vm521_vm1, %v519_v0 }
 0x130   :  { %v180_v1 = vmul.f32 0.6931472, %v417_v63 }
 0x132   :  { %367 = vmatmul.mubr.f32.gmra.mrb[4].mxu1 %v180_v1 }
 0x1fd   :  { %v270_v3 = vpop.f32.mrb[0].mxu1 }
 0x1fe   :  { %v271_v4 = vadd.f32 %v308_v2, %v270_v3  ;;  %v362_v5 = vpop.f32.mrb[1].mxu1 }
 0x200   :  { %284 = vst [vmem:[#allocation8] sm:$0xff] %v271_v4 }
 0x201   :  { %v275_v6 = vpop.f32.mrb[2].mxu1 }
 0x202   :  { %v276_v7 = vadd.f32 %v308_v2, %v275_v6  ;;  %v365_v8 = vpop.f32.mrb[3].mxu1 }
 0x204   :  { %285 = vst [vmem:[#allocation8 + $0x8] sm:$0xff] %v276_v7 }
 0x205   :  { %v280_v9 = vpop.f32.mrb[4].mxu1 }
 0x206   :  { %v281_v10 = vadd.f32 %v308_v2, %v280_v9  ;;  %v368_v11 = vpop.f32.mrb[5].mxu1 }
 0x208   :  { %286 = vst [vmem:[#allocation8 + $0x10] sm:$0xff] %v281_v10 }
 0x209   :  { %495 = shalt.err (!%p492_p0)
}
 0x20a   :  { %s496_s6 = scalar_lea.hbm %s621_s4, 384 }
 0x20b   :  { %p497_p1 = scmp.ne.s32.totalorder %s621_s4, %s496_s6  ;;  %p500_p2 = scmp.lt.u32.totalorder %s496_s6, %s621_s4 }
 0x20d   :  { %p502_p3 = pnand %p500_p2, %p497_p1 }
 0x20f   :  { %505 = shalt.err (!%p502_p3)
}
 0x210   :  { %298 = dma.vmem_to_hbm [thread:$0]  %s293_s29, 384, %s621_s4, [#allocation4], %s516_s1, %s516_s1, %s517_s13  }
 0x211   :  { %510 = dma.done.wait [#allocation4], 384  }
 0x212   :  { %511 = vsyncadd [#allocation4], 4294966912 }
 0x213   :  { %302 = vsyncpa [#allocation3], 1 }
 0x214   :  { %303 = vsyncpa [#allocation6], 1 }
 0x215   :  { %304 = vsyncpa [#allocation4], 1 }

</bundles_post_ra>
